<compile_context>
chip_gen: v5e
topology: v5e:2x2
jax: 0.10.0
libtpu: 0.0.40
codegen_flags: <defaults>
</compile_context>

<pallas_src>
import numpy as np
import jax
import jax.numpy as jnp
from jax import lax
from jax.experimental import pallas as pl
from jax.experimental.pallas import tpu as pltpu


def _round_up(x, m):
    return ((x + m - 1) // m) * m


def _cdiv(a, b):
    return -(-a // b)


# --------------------- Kernel 1: min-image neighbor mask (int8, upper-tri tile pairs) ---------------------
def _make_nbr_kernel(cell_xyz, cut2):
    cell_xyz = tuple(float(v) for v in cell_xyz)
    cut2 = float(cut2)

    def kernel(ti_ref, tj_ref, xa_ref, xb_ref, mask_ref):
        # ti_ref / tj_ref are the scalar-prefetch tile-pair tables; only the index_maps use them.
        del ti_ref, tj_ref
        acc = None
        for k in range(3):                         # static unroll over x, y, z
            ck = cell_xyz[k]                       # baked constants (no SMEM loads)
            hk = 0.5 * ck
            a = xa_ref[:, k:k + 1]                 # (tm, 1)
            b = xb_ref[k:k + 1, :]                 # (1, tn)
            d = a - b                              # (tm, tn) outer broadcast
            # min-image wrap, 2-select form (equivalent to torchmd get_offsets)
            d = jnp.where(d >= hk, d - ck, d)
            d = jnp.where(d < -hk, d + ck, d)
            sq = d * d
            acc = sq if acc is None else acc + sq
        # Self-pairs (the diagonal) are removed on the host via triu; distinct coincident
        # atoms therefore stay neighbors (matches the distance-only cutoff criterion).
        mask_ref[...] = (acc < cut2).astype(jnp.int8)

    return kernel


def nbr_mask(xyz, cell_xyz, cutoff):
    """xyz: (B, N, 3) f32 -> (B, N_pad, N_pad) int8 neighbor mask.

    Only tile pairs with ti <= tj are computed (strict elementwise upper triangle is
    always valid); lower-triangle tiles are left unwritten (garbage) and zeroed on host.
    """
    B, N, _ = xyz.shape
    N_pad = max(128, _round_up(N, 128))            # lane-dense int8 stores (>=128 lanes)
    if N_pad != N:
        # dummy atoms; their rows/cols are sliced away before the angle-list build
        xyz = jnp.concatenate([xyz, jnp.zeros((B, N_pad - N, 3), xyz.dtype)], axis=1)

    # fixed tiling (<=512) keeps the f32 temporaries + double-buffered int8 output at a
    # few MiB on every generation (never a full (N,N) block -> safe on v7x 64 MiB VMEM)
    if N_pad % 512 == 0:
        tm = 512
    elif N_pad % 256 == 0:
        tm = 256
    else:
        tm = 128
    T = N_pad // tm

    # upper-triangular tile-pair table (mask symmetry -> ~2x less work)
    pairs = [(i, j) for i in range(T) for j in range(i, T)]
    ti_tbl = jnp.asarray([p[0] for p in pairs], jnp.int32)
    tj_tbl = jnp.asarray([p[1] for p in pairs], jnp.int32)
    P = len(pairs)

    xa = xyz                                       # (B, N_pad, 3)
    xb = jnp.transpose(xyz, (0, 2, 1))             # (B, 3, N_pad)

    kernel = _make_nbr_kernel(cell_xyz, float(cutoff) ** 2)
    # TODO(synk): when B == 1 and T is small, split the ti axis into a separate "parallel"
    # grid axis so v7x's second TensorCore is not idle on this VALU-bound kernel.
    return pl.pallas_call(
        kernel,
        out_shape=jax.ShapeDtypeStruct((B, N_pad, N_pad), jnp.int8),
        grid_spec=pltpu.PrefetchScalarGridSpec(
            num_scalar_prefetch=2,
            grid=(B, P),
            in_specs=[
                pl.BlockSpec((None, tm, 3), lambda b, p, ti, tj: (b, ti[p], 0)),
                pl.BlockSpec((None, 3, tm), lambda b, p, ti, tj: (b, 0, tj[p])),
            ],
            out_specs=pl.BlockSpec((None, tm, tm),
                                   lambda b, p, ti, tj: (b, ti[p], tj[p])),
        ),
        compiler_params=pltpu.CompilerParams(
            dimension_semantics=("parallel", "arbitrary")),
    )(ti_tbl, tj_tbl, xa, xb)


# --------------------- Kernel 2: cos(angle) over the angle list ---------------------
def _make_angle_kernel(cell_xyz):
    cx, cy, cz = (float(v) for v in cell_xyz)

    def kernel(d1_ref, d2_ref, cos_ref):
        # per-row cell column (rows: x, y, z, pad) built from baked constants
        rows = lax.broadcasted_iota(jnp.int32, (4, 1), 0)
        c = jnp.where(rows == 0, cx,
            jnp.where(rows == 1, cy,
            jnp.where(rows == 2, cz, 1.0))).astype(jnp.float32)
        hc = 0.5 * c

        def wrap(d):                               # min-image wrap (2-select form)
            d = jnp.where(d >= hc, d - c, d)
            d = jnp.where(d < -hc, d + c, d)
            return d

        d1 = wrap(d1_ref[...])                     # (4, tile): bond_vec1 (x, y, z, 0)
        d2 = wrap(d2_ref[...])                     # (4, tile): bond_vec2 (x, y, z, 0)
        dot = jnp.sum(d1 * d2, axis=0, keepdims=True)   # (1, tile) 4-row reduces
        n1 = jnp.sum(d1 * d1, axis=0, keepdims=True)
        n2 = jnp.sum(d2 * d2, axis=0, keepdims=True)
        # clamp only affects zero-padded lanes (valid bonds have positive length)
        den = jnp.maximum(n1 * n2, 1e-30)
        cos_ref[...] = dot * lax.rsqrt(den)        # rsqrt -> EUP slot, no VPU divide

    return kernel


def cos_angles_pallas(d1, d2, cell_xyz, *, tile):
    A_pad = d1.shape[1]
    kernel = _make_angle_kernel(cell_xyz)
    out = pl.pallas_call(
        kernel,
        out_shape=jax.ShapeDtypeStruct((1, A_pad), jnp.float32),
        grid=(A_pad // tile,),
        in_specs=[
            pl.BlockSpec((4, tile), lambda a: (0, a)),
            pl.BlockSpec((4, tile), lambda a: (0, a)),
        ],
        out_specs=pl.BlockSpec((1, tile), lambda a: (0, a)),
        compiler_params=pltpu.CompilerParams(dimension_semantics=("arbitrary",)),
    )(d1, d2)
    return out[0]


def _pad_and_tile(A, target=32768):
    """Big lane tiles amortize the ~0.35us/step pipeline overhead (a 32K-lane step moves
    ~1 MiB of packed bond vectors).  The tile is NOT shrunk just to create >=2 steps for
    v7x megacore: kernel 2 is HBM-bound and both cores share the same HBM."""
    a128 = _round_up(max(A, 1), 128)
    ntiles = _cdiv(a128, target)
    tile = _round_up(_cdiv(a128, ntiles), 128)
    return tile * ntiles, tile


# --------------------- host-side glue (dynamic-shape angle-list construction) ---------------------
def build_angle_list(mask):
    """mask: (B, N, N) symmetric bool (diag False) -> (A, 4) int32 rows (frame, i, center, j).

    Vectorized per frame (O(N^3) bool temporary).
    """
    # TODO(synk): chunk over centers for very large N to bound the O(N^3) temporary.
    B, N, _ = mask.shape
    iu = np.triu(np.ones((N, N), dtype=bool), 1)
    chunks = []
    for b in range(B):
        m = mask[b]
        both = m[:, :, None] & m[:, None, :]      # (center, i, j): i and j both nbrs of center
        both &= iu[None, :, :]                    # unordered pairs, i < j
        c, i, j = np.nonzero(both)
        if c.size:
            chunks.append(np.stack([np.full(c.shape, b, np.int32),
                                    i.astype(np.int32),
                                    c.astype(np.int32),
                                    j.astype(np.int32)], axis=1))
    if not chunks:
        return np.zeros((0, 4), np.int32)
    return np.concatenate(chunks, axis=0)


class AnglesPallas:
    """JAX/Pallas port of torchmd.observable.Angles."""

    def __init__(self, natoms, cell_diag, nbins, angle_range, cutoff=3.0, index_tuple=None,
                 width=None):
        self.natoms = int(natoms)
        self.cell = np.asarray(cell_diag, np.float32)      # diagonal of the cell
        self.cutoff = float(cutoff)
        self.index_tuple = index_tuple
        # bins / GaussianSmearing width: constructed deterministically, UNUSED in forward
        self.bins = jnp.linspace(angle_range[0], angle_range[1], nbins + 1)
        self.width = float(self.bins[1] - self.bins[0]) if width is None else float(width)
        self.angle_list = None
        self.nbr_mask_np = None

    def forward(self, xyz):
        xyz = jnp.reshape(xyz, (-1, self.natoms, 3)).astype(jnp.float32)
        N = self.natoms
        cell_xyz = tuple(float(v) for v in self.cell)

        # generate_nbr_list hot path -> Pallas kernel 1 (int8 mask, upper-tri tile pairs)
        mask_pad = nbr_mask(xyz, cell_xyz, self.cutoff)
        # on-device slice to the real N x N block before the D2H copy (less transfer)
        # TODO(synk): bit-pack the mask (8 pairs/byte) to shrink the D2H copy further.
        m = np.asarray(jax.device_get(mask_pad[:, :N, :N])) != 0
        # strict upper triangle is always computed; zero the (unwritten) lower tiles and
        # the diagonal, then mirror to a symmetric adjacency.
        iu = np.triu(np.ones((N, N), dtype=bool), 1)
        m = m & iu[None]
        m = m | np.transpose(m, (0, 2, 1))
        self.nbr_mask_np = m

        # generate_angle_list: data-dependent, dynamic shape -> host (as in reference, on CPU)
        angle_list = build_angle_list(m)
        self.angle_list = angle_list
        A = int(angle_list.shape[0])
        if A == 0:
            return jnp.zeros((0,), jnp.float32)

        # gather + raw bond vectors on device (XLA fuses into the gather); kernel 2 then
        # streams two dense (4, A_pad) arrays -> 8 f32 per angle instead of 16.
        b, i, c, j = (angle_list[:, 0], angle_list[:, 1],
                      angle_list[:, 2], angle_list[:, 3])
        d1_raw = xyz[b, i] - xyz[b, c]             # (A, 3)
        d2_raw = xyz[b, j] - xyz[b, c]             # (A, 3)

        A_pad, tile = _pad_and_tile(A)

        def pack4(d):
            q = jnp.zeros((4, A_pad), jnp.float32)
            return q.at[:3, :A].set(jnp.transpose(d))   # rows 0..2 = x,y,z; row 3 zero

        # compute_angle hot path -> Pallas kernel 2
        cos = cos_angles_pallas(pack4(d1_raw), pack4(d2_raw), cell_xyz, tile=tile)
        return cos[:A]


# --------------------- numpy reference (mirrors torchmd compute_angle) ---------------------
def compute_angle_ref(xyz_np, angle_list, cell_np):
    p1 = xyz_np[angle_list[:, 0], angle_list[:, 1]]
    pc = xyz_np[angle_list[:, 0], angle_list[:, 2]]
    p3 = xyz_np[angle_list[:, 0], angle_list[:, 3]]
    d1 = p1 - pc
    d2 = p3 - pc

    def offsets(d):
        return (-(d >= 0.5 * cell_np).astype(np.float32)
                + (d < -0.5 * cell_np).astype(np.float32))

    d1 = d1 + offsets(d1) * cell_np
    d2 = d2 + offsets(d2) * cell_np
    dot = (d1 * d2).sum(-1)
    norm = np.sqrt((d1 ** 2).sum(-1) * (d2 ** 2).sum(-1))
    return dot / norm


if __name__ == "__main__":
    key = jax.random.PRNGKey(0)
    B, N = 2, 16
    nbins = 32
    angle_range = (-1.0, 1.0)
    cutoff = 3.0
    cell_diag = np.array([5.0, 5.0, 5.0], np.float32)   # deterministic "system" cell

    xyz = jax.random.uniform(key, (B, N, 3), dtype=jnp.float32) * jnp.asarray(cell_diag)

    model = AnglesPallas(natoms=N, cell_diag=cell_diag, nbins=nbins,
                         angle_range=angle_range, cutoff=cutoff)
    cos = model.forward(xyz)
    cos = jax.block_until_ready(cos)

    xyz_np64 = np.asarray(jax.device_get(xyz), np.float64).reshape(B, N, 3)

    # ---- kernel 1 check: symmetric neighbor mask vs brute-force min-image distances ----
    diff = xyz_np64[:, :, None, :] - xyz_np64[:, None, :, :]
    off = (-(diff >= 0.5 * cell_diag).astype(np.float64)
           + (diff < -0.5 * cell_diag).astype(np.float64))
    diff = diff + off * cell_diag
    dist2 = (diff ** 2).sum(-1)
    ref_mask = dist2 < cutoff ** 2
    for b in range(B):
        np.fill_diagonal(ref_mask[b], False)
    mism = model.nbr_mask_np != ref_mask
    # tolerate disagreement only for pairs sitting numerically at the cutoff boundary
    assert not np.any(mism & (np.abs(dist2 - cutoff ** 2) > 1e-3)), "nbr mask mismatch"

    # ---- kernel 2 check: cos(angle) against the reference math ----
    if model.angle_list.shape[0] > 0:
        cos_ref = compute_angle_ref(xyz_np64.astype(np.float32),
                                    model.angle_list, cell_diag)
        np.testing.assert_allclose(np.asarray(cos), cos_ref, rtol=5e-5, atol=1e-5)

    print("KERNEL_OK")
</pallas_src>

<mosaic_0001>
module attributes {stable_mosaic.version = 11 : i64} {
  func.func @kernel(%arg0: i32, %arg1: i32, %arg2: memref<1xi32, #tpu.memory_space<smem>>, %arg3: memref<1xi32, #tpu.memory_space<smem>>, %arg4: memref<1x128x3xf32, #tpu.memory_space<vmem>>, %arg5: memref<1x3x128xf32, #tpu.memory_space<vmem>>, %arg6: memref<1x128x128xi8, #tpu.memory_space<vmem>>) attributes {dimension_semantics = [#tpu.dimension_semantics<parallel>, #tpu.dimension_semantics<arbitrary>], iteration_bounds = array<i64: 2, 1>, scalar_prefetch = 2 : i64, scratch_operands = 0 : i64, tpu.core_type = #tpu.core_type<tc>, window_params = [{transform_indices = @transform_0, window_bounds = array<i64: 1, 128, 3>}, {transform_indices = @transform_1, window_bounds = array<i64: 1, 3, 128>}, {transform_indices = @transform_2, window_bounds = array<i64: 1, 128, 128>}]} {
    %c0 = arith.constant 0 : index
    %c0_0 = arith.constant 0 : index
    %c0_1 = arith.constant 0 : index
    %0 = vector.load %arg4[%c0, %c0_0, %c0_1] : memref<1x128x3xf32, #tpu.memory_space<vmem>>, vector<1x128x1xf32>
    %1 = vector.shape_cast %0 : vector<1x128x1xf32> to vector<128x1xf32>
    %c0_2 = arith.constant 0 : index
    %c0_3 = arith.constant 0 : index
    %c0_4 = arith.constant 0 : index
    %2 = vector.load %arg5[%c0_2, %c0_3, %c0_4] : memref<1x3x128xf32, #tpu.memory_space<vmem>>, vector<1x1x128xf32>
    %3 = vector.shape_cast %2 : vector<1x1x128xf32> to vector<1x128xf32>
    %4 = vector.broadcast %1 : vector<128x1xf32> to vector<128x128xf32>
    %5 = vector.broadcast %3 : vector<1x128xf32> to vector<128x128xf32>
    %6 = arith.subf %4, %5 : vector<128x128xf32>
    %cst = arith.constant 2.500000e+00 : f32
    %7 = vector.broadcast %cst : f32 to vector<128x128xf32>
    %8 = arith.cmpf oge, %6, %7 : vector<128x128xf32>
    %cst_5 = arith.constant 5.000000e+00 : f32
    %9 = vector.broadcast %cst_5 : f32 to vector<128x128xf32>
    %10 = arith.subf %6, %9 : vector<128x128xf32>
    %11 = arith.select %8, %10, %6 : vector<128x128xi1>, vector<128x128xf32>
    %cst_6 = arith.constant -2.500000e+00 : f32
    %12 = vector.broadcast %cst_6 : f32 to vector<128x128xf32>
    %13 = arith.cmpf olt, %11, %12 : vector<128x128xf32>
    %cst_7 = arith.constant 5.000000e+00 : f32
    %14 = vector.broadcast %cst_7 : f32 to vector<128x128xf32>
    %15 = arith.addf %11, %14 : vector<128x128xf32>
    %16 = arith.select %13, %15, %11 : vector<128x128xi1>, vector<128x128xf32>
    %17 = arith.mulf %16, %16 : vector<128x128xf32>
    %c0_8 = arith.constant 0 : index
    %c0_9 = arith.constant 0 : index
    %c1 = arith.constant 1 : index
    %18 = vector.load %arg4[%c0_8, %c0_9, %c1] : memref<1x128x3xf32, #tpu.memory_space<vmem>>, vector<1x128x1xf32>
    %19 = vector.shape_cast %18 : vector<1x128x1xf32> to vector<128x1xf32>
    %c0_10 = arith.constant 0 : index
    %c1_11 = arith.constant 1 : index
    %c0_12 = arith.constant 0 : index
    %20 = vector.load %arg5[%c0_10, %c1_11, %c0_12] : memref<1x3x128xf32, #tpu.memory_space<vmem>>, vector<1x1x128xf32>
    %21 = vector.shape_cast %20 : vector<1x1x128xf32> to vector<1x128xf32>
    %22 = vector.broadcast %19 : vector<128x1xf32> to vector<128x128xf32>
    %23 = vector.broadcast %21 : vector<1x128xf32> to vector<128x128xf32>
    %24 = arith.subf %22, %23 : vector<128x128xf32>
    %cst_13 = arith.constant 2.500000e+00 : f32
    %25 = vector.broadcast %cst_13 : f32 to vector<128x128xf32>
    %26 = arith.cmpf oge, %24, %25 : vector<128x128xf32>
    %cst_14 = arith.constant 5.000000e+00 : f32
    %27 = vector.broadcast %cst_14 : f32 to vector<128x128xf32>
    %28 = arith.subf %24, %27 : vector<128x128xf32>
    %29 = arith.select %26, %28, %24 : vector<128x128xi1>, vector<128x128xf32>
    %cst_15 = arith.constant -2.500000e+00 : f32
    %30 = vector.broadcast %cst_15 : f32 to vector<128x128xf32>
    %31 = arith.cmpf olt, %29, %30 : vector<128x128xf32>
    %cst_16 = arith.constant 5.000000e+00 : f32
    %32 = vector.broadcast %cst_16 : f32 to vector<128x128xf32>
    %33 = arith.addf %29, %32 : vector<128x128xf32>
    %34 = arith.select %31, %33, %29 : vector<128x128xi1>, vector<128x128xf32>
    %35 = arith.mulf %34, %34 : vector<128x128xf32>
    %36 = arith.addf %17, %35 : vector<128x128xf32>
    %c0_17 = arith.constant 0 : index
    %c0_18 = arith.constant 0 : index
    %c2 = arith.constant 2 : index
    %37 = vector.load %arg4[%c0_17, %c0_18, %c2] : memref<1x128x3xf32, #tpu.memory_space<vmem>>, vector<1x128x1xf32>
    %38 = vector.shape_cast %37 : vector<1x128x1xf32> to vector<128x1xf32>
    %c0_19 = arith.constant 0 : index
    %c2_20 = arith.constant 2 : index
    %c0_21 = arith.constant 0 : index
    %39 = vector.load %arg5[%c0_19, %c2_20, %c0_21] : memref<1x3x128xf32, #tpu.memory_space<vmem>>, vector<1x1x128xf32>
    %40 = vector.shape_cast %39 : vector<1x1x128xf32> to vector<1x128xf32>
    %41 = vector.broadcast %38 : vector<128x1xf32> to vector<128x128xf32>
    %42 = vector.broadcast %40 : vector<1x128xf32> to vector<128x128xf32>
    %43 = arith.subf %41, %42 : vector<128x128xf32>
    %cst_22 = arith.constant 2.500000e+00 : f32
    %44 = vector.broadcast %cst_22 : f32 to vector<128x128xf32>
    %45 = arith.cmpf oge, %43, %44 : vector<128x128xf32>
    %cst_23 = arith.constant 5.000000e+00 : f32
    %46 = vector.broadcast %cst_23 : f32 to vector<128x128xf32>
    %47 = arith.subf %43, %46 : vector<128x128xf32>
    %48 = arith.select %45, %47, %43 : vector<128x128xi1>, vector<128x128xf32>
    %cst_24 = arith.constant -2.500000e+00 : f32
    %49 = vector.broadcast %cst_24 : f32 to vector<128x128xf32>
    %50 = arith.cmpf olt, %48, %49 : vector<128x128xf32>
    %cst_25 = arith.constant 5.000000e+00 : f32
    %51 = vector.broadcast %cst_25 : f32 to vector<128x128xf32>
    %52 = arith.addf %48, %51 : vector<128x128xf32>
    %53 = arith.select %50, %52, %48 : vector<128x128xi1>, vector<128x128xf32>
    %54 = arith.mulf %53, %53 : vector<128x128xf32>
    %55 = arith.addf %36, %54 : vector<128x128xf32>
    %cst_26 = arith.constant 9.000000e+00 : f32
    %56 = vector.broadcast %cst_26 : f32 to vector<128x128xf32>
    %57 = arith.cmpf olt, %55, %56 : vector<128x128xf32>
    %58 = arith.extui %57 : vector<128x128xi1> to vector<128x128xi8>
    %c0_27 = arith.constant 0 : index
    %c0_28 = arith.constant 0 : index
    %c0_29 = arith.constant 0 : index
    %59 = vector.load %arg6[%c0_27, %c0_28, %c0_29] : memref<1x128x128xi8, #tpu.memory_space<vmem>>, vector<1x128x128xi8>
    %60 = vector.shape_cast %59 : vector<1x128x128xi8> to vector<128x128xi8>
    %61 = vector.shape_cast %58 : vector<128x128xi8> to vector<1x128x128xi8>
    tpu.vector_store %arg6[%c0_27, %c0_28, %c0_29], %61 {strides = array<i32>} : memref<1x128x128xi8, #tpu.memory_space<vmem>>, vector<1x128x128xi8>,
    return
  }
  func.func @transform_0(%arg0: i32, %arg1: i32, %arg2: memref<1xi32, #tpu.memory_space<smem>>, %arg3: memref<1xi32, #tpu.memory_space<smem>>) -> (i32, i32, i32) {
    %0 = arith.index_cast %arg1 : i32 to index
    %1 = memref.load %arg2[%0] : memref<1xi32, #tpu.memory_space<smem>>
    %c0_i32 = arith.constant 0 : i32
    %c0_i32_0 = arith.constant 0 : i32
    return %arg0, %1, %c0_i32 : i32, i32, i32
  }
  func.func @transform_1(%arg0: i32, %arg1: i32, %arg2: memref<1xi32, #tpu.memory_space<smem>>, %arg3: memref<1xi32, #tpu.memory_space<smem>>) -> (i32, i32, i32) {
    %0 = arith.index_cast %arg1 : i32 to index
    %1 = memref.load %arg3[%0] : memref<1xi32, #tpu.memory_space<smem>>
    %c0_i32 = arith.constant 0 : i32
    %c0_i32_0 = arith.constant 0 : i32
    return %arg0, %c0_i32, %1 : i32, i32, i32
  }
  func.func @transform_2(%arg0: i32, %arg1: i32, %arg2: memref<1xi32, #tpu.memory_space<smem>>, %arg3: memref<1xi32, #tpu.memory_space<smem>>) -> (i32, i32, i32) {
    %0 = arith.index_cast %arg1 : i32 to index
    %1 = memref.load %arg2[%0] : memref<1xi32, #tpu.memory_space<smem>>
    %2 = arith.index_cast %arg1 : i32 to index
    %3 = memref.load %arg3[%2] : memref<1xi32, #tpu.memory_space<smem>>
    %c0_i32 = arith.constant 0 : i32
    return %arg0, %1, %3 : i32, i32, i32
  }
}

</mosaic_0001>

<bundles_post_ra>
// kernel: tpu_custom_call.1
= control target key start
LH: loop header
LB: loop body
LE: loop exit
PB: predicated region body
PF: predicated region fallthrough
CT: control target
= control target key end

     0   :  { %s1672_s0 = inlined_call_operand.<no memory space> [shape: s32[1], index: 0, kind: input, shape index: {}]   ;;  %s1673_s1 = inlined_call_operand.<no memory space> [shape: s32[1], index: 1, kind: input, shape index: {}]   ;;  %s1674_s2 = inlined_call_operand.vmem [shape: f32[2,128,3], index: 2, kind: input, shape index: {}]   ;;  %s1675_s3 = inlined_call_operand.vmem [shape: f32[2,3,128], index: 3, kind: input, shape index: {}]   ;;  %s1676_s4 = inlined_call_operand.hbm [shape: s8[2,128,128], index: 4, kind: output, shape index: {}]  }
   0x1   :  { %9 = sst [smem:[#allocation3]] %s1672_s0 }
   0x2   :  { %10 = sst [smem:[#allocation4]] %s1673_s1 }
   0x3   :  { %11 = vsyncpa [#allocation6], 0 }
   0x4   :  { %13 = vsyncpa [#allocation6 + $0x1], 0  ;;  %s1291_s19 = smov 0   ;;  %s1293_s20 = smov 0  }
   0x5   :  { %s1295_s21 = smov 0   ;;  %s1297_s22 = smov 0  }
   0x6   :  { %s1299_s23 = smov 0   ;;  %s1301_s24 = smov 0  }
   0x7 LB: > { %s1039_s0 = sadd.s32 4294967295, %s1253_s24   ;;  %s1040_s1 = sadd.s32 4294967294, %s1253_s24   ;;  %s1253_s24 = sphi %s1301_s24, %s19_s24   ;;  %s1249_s23 = sphi %s1299_s23, %s1689_s23   ;;  %s1245_s22 = sphi %s1297_s22, %s1688_s22   ;;  %s1241_s21 = sphi %s1295_s21, %s1687_s21   ;;  %s1237_s20 = sphi %s1293_s20, %s1686_s20   ;;  %s1233_s19 = sphi %s1291_s19, %s1685_s19  }
   0x8   : > { %s31_s25 = sadd.s32 1, %s1249_s23  ;;  %s106_s26 = sadd.s32 1, %s1241_s21 }
   0x9   : > { %p33_p0 = scmp.ge.s32.totalorder %s31_s25, 2  ;;  %p116_p1 = scmp.ne.s32.totalorder %s1241_s21, %s1237_s20 }
   0xa   : > { %p117_p2 = scmp.eq.s32.totalorder %s1039_s0, 1  ;;  %p122_p3 = scmp.ne.s32.totalorder %s1237_s20, %s1233_s19 }
   0xb   : > { %s1691_s25 = smov (%p33_p0, %s31_s25), 0  ;;  %p123_p4 = scmp.eq.s32.totalorder %s1040_s1, 1 }
   0xc   : > { %s99_s27 = ssub.s32 %s1249_s23, %s1691_s25  ;;  %p1333_p5 = por %p117_p2, %p116_p1 }
   0xd   : > { %p1337_p6 = por %p123_p4, %p122_p3  ;;  %p104_p7 = scmp.eq.s32.totalorder %s99_s27, 0 }
   0xe   : > { %p1043_p8 = scmp.ge.s32.totalorder %s1253_s24, 1  ;;  %p168_p9 = scmp.lt.s32.totalorder %s1253_s24, 3 }
   0xf   : > { %s1344_s30 = scalar_select %p104_p7, %s1241_s21, %s106_s26  }
  0x10   : > { %p169_p10 = pnand %p1043_p8, %p168_p9 }
  0x11   : > { %s203_s5 = sld [smem:[#allocation3]] (!%p169_p10)  ;;  %p205_p11 = scmp.lt.s32.totalorder (!%p169_p10), %s1245_s22, 1 }
  0x12   : > { %172 = sbr.rel (%p169_p10) target bundleno = 301 (0x12d), region = 28  ;;  %s215_s6 = sld [smem:[#allocation4]] (!%p169_p10) }
  0x13   : > { %s200_s1 = sand.u32 (!%p169_p10), 1, %s1237_s20  }
  0x14   : > { %s1044_s26 = sshll.u32 (!%p169_p10), %s200_s1, 5 }
  0x15   : > { %s1599_s27 = scalar_lea.vmem (!%p169_p10), [#allocation5], %s1044_s26 }
  0x16   : > { %s941_s14 = sshll.u32 (!%p169_p10), %s1599_s27, 4  ;;  %s942_s14 = int_to_ptr.vmem [resolvable:$true] %s941_s14 }
  0x17   : > { %v1255_v0 = vmov 0   ;;  %s206_s7 = scalar_select %p205_p11, %s1245_s22, 1  ;;  %v1256_v17 = vmov 1   ;;  %v1257_v18 = vmov 2  }
  0x18   : > { %1165 = vset.pattern.permute.xlu2 %v1255_v0  ;;  %1164 = vset.pattern.permute.xlu1 %v1255_v0  ;;  %s1045_s8 = sshll.u32 %s203_s5, 4  ;;  %p218_p13 = scmp.lt.s32.totalorder %s215_s6, 0 }
  0x19   : > { %1163 = vset.pattern.permute.xlu0 %v1255_v0  ;;  %p207_p12 = scmp.lt.s32.totalorder %s1045_s8, 15  ;;  %s1046_s9 = sshll.u32 %s206_s7, 4 }
  0x1a   : > { %s1695_s6 = smov (!%p218_p13, %s215_s6), 0  ;;  %s1602_s5 = sld [smem:[#allocation3]] }
  0x1b   : > { %s1693_s8 = smov (!%p207_p12, %s1045_s8), 15  ;;  %s220_s12 = sadd.s32 %s1695_s6, %s206_s7 }
  0x1c   : > { %s210_s10 = sadd.s32 %s1046_s9, %s1693_s8  ;;  %s1048_s16 = sshll.u32 %s220_s12, 2 }
  0x1d   : > { %s1047_s11 = sshll.u32 %s210_s10, 3  ;;  %s1359_s0 = scalar_lea.vmem %s1675_s3, %s1048_s16 }
  0x1e   : > { %s1354_s15 = scalar_lea.vmem %s1674_s2, %s1047_s11  ;;  %v1386_v19 = vld [vmem:[%s1359_s0] ss:$0 sm:$0xff]  ;;  %v1409_v39 = vld [vmem:[%s1359_s0 + $0x1] ss:$0 sm:$0xff]  ;;  %s932_s6 = sld [smem:[#allocation4]] }
  0x1f   : > { %v1362_v1 = vld [vmem:[%s1354_s15 + $0x20] sm:$0xff]  ;;  %v231_v2 = vld [vmem:[%s1354_s15 + $0x10] sm:$0xff]  ;;  %v234_v4 = vld [vmem:[%s1354_s15 + $0x28] sm:$0xff]  ;;  %s1099_s9 = sshll.u32 %s1245_s22, 2  ;;  %s924_s16 = scalar_lea.sflag [#allocation6], %s200_s1 }
  0x20   : > { %v229_v3 = vld [vmem:[%s1354_s15] sm:$0xff]  ;;  %268 = vperm.xlu2 %1165, %v1362_v1   ;;  %258 = vperm.xlu1 %1164, %v231_v2   ;;  %v232_v5 = vld [vmem:[%s1354_s15 + $0x18] sm:$0xff]  ;;  %v230_v6 = vld [vmem:[%s1354_s15 + $0x8] sm:$0xff]  ;;  %s1098_s7 = sshll.u32 %s1602_s5, 2  ;;  %s1195_s5 = scalar_lea.hbm %s1676_s4, 64 }
  0x21   : > { %248 = vperm.xlu0 %1163, %v229_v3   ;;  %v237_v7 = vld [vmem:[%s1354_s15 + $0x40] sm:$0xff]  ;;  %v236_v8 = vld [vmem:[%s1354_s15 + $0x38] sm:$0xff]  ;;  %v235_v9 = vld [vmem:[%s1354_s15 + $0x30] sm:$0xff] }
  0x22   : > { %v240_v10 = vld [vmem:[%s1354_s15 + $0x58] sm:$0xff]  ;;  %v239_v11 = vld [vmem:[%s1354_s15 + $0x50] sm:$0xff]  ;;  %v238_v12 = vld [vmem:[%s1354_s15 + $0x48] sm:$0xff] }
  0x23   : > { %v243_v13 = vld [vmem:[%s1354_s15 + $0x70] sm:$0xff]  ;;  %v242_v14 = vld [vmem:[%s1354_s15 + $0x68] sm:$0xff]  ;;  %v241_v15 = vld [vmem:[%s1354_s15 + $0x60] sm:$0xff] }
  0x24   : > { %v1380_v16 = vld [vmem:[%s1354_s15 + $0x78] sm:$0xff]  ;;  %s936_s8 = sadd.s32 %s1098_s7, %s932_s6 }
  0x25   : > { %s938_s10 = sadd.s32 %s1099_s9, %s936_s8 }
  0x26   : > { %s1100_s11 = sshll.u32 %s938_s10, 3 }
  0x27   : > { %s940_s13 = scalar_lea.hbm %s1676_s4, %s1100_s11 }
  0x28   : > { %273 = vperm.xlu2 %1165, %v234_v4   ;;  %263 = vperm.xlu1 %1164, %v232_v5   ;;  %s943_s15 = sshll.u32 %s940_s13, 4  ;;  %s944_s15 = int_to_ptr.hbm [resolvable:$true] %s943_s15 }
  0x29   : > { %253 = vperm.xlu0 %1163, %v230_v6   ;;  %s1189_s17 = sshra.s32 %s944_s15, 4  ;;  %s1190_s17 = int_to_ptr.hbm [resolvable:$true] %s1189_s17 }
  0x2a   : > { %s1191_s18 = scalar_lea.hbm %s1190_s17, 32  ;;  %p1196_p3 = scmp.lt.s32.totalorder %s1190_s17, %s1676_s4 }
  0x2b   : > { %p1192_p0 = scmp.ne.s32.totalorder %s1190_s17, %s1191_s18  ;;  %p1197_p4 = scmp.lt.s32.totalorder %s1195_s5, %s1191_s18 }
  0x2d   : > { %p1193_p1 = pnand %p1192_p0, %p1333_p5  ;;  %p1198_p7 = por %p1197_p4, %p1196_p3 }
  0x2f   : > { %p1194_p2 = pneg %p1193_p1 }
  0x30   : > { %288 = vperm.xlu2 %1165, %v237_v7   ;;  %283 = vperm.xlu1 %1164, %v236_v8  }
  0x31   : > { %278 = vperm.xlu0 %1163, %v235_v9   ;;  %p1199_p8 = pnand %p1198_p7, %p1194_p2 }
  0x38   : > { %303 = vperm.xlu2 %1165, %v240_v10   ;;  %298 = vperm.xlu1 %1164, %v239_v11  }
  0x39   : > { %293 = vperm.xlu0 %1163, %v238_v12  }
  0x40   : > { %318 = vperm.xlu2 %1165, %v243_v13   ;;  %313 = vperm.xlu1 %1164, %v242_v14  }
  0x41   : > { %308 = vperm.xlu0 %1163, %v241_v15  }
  0x48   : > { %1167 = vset.pattern.permute.xlu2 %v1256_v17  ;;  %1166 = vset.pattern.permute.xlu1 %v1256_v17 }
  0x49   : > { %323 = vperm.xlu0 %1163, %v1380_v16   ;;  %461 = vperm.xlu2 %1167, %v230_v6  }
  0x4a   : > { %457 = vperm.xlu1 %1166, %v229_v3  }
  0x51   : > { %1168 = vset.pattern.permute.xlu0 %v1256_v17  ;;  %473 = vperm.xlu2 %1167, %v1362_v1  }
  0x52   : > { %469 = vperm.xlu1 %1166, %v232_v5   ;;  %465 = vperm.xlu0 %1168, %v231_v2  }
  0x59   : > { %481 = vperm.xlu2 %1167, %v235_v9  }
  0x5a   : > { %477 = vperm.xlu1 %1166, %v234_v4   ;;  %485 = vperm.xlu0 %1168, %v236_v8  }
  0x61   : > { %493 = vperm.xlu2 %1167, %v238_v12  }
  0x62   : > { %489 = vperm.xlu1 %1166, %v237_v7   ;;  %497 = vperm.xlu0 %1168, %v239_v11  }
  0x69   : > { %505 = vperm.xlu2 %1167, %v241_v15  }
  0x6a   : > { %501 = vperm.xlu1 %1166, %v240_v10   ;;  %509 = vperm.xlu0 %1168, %v242_v14  }
  0x71   : > { %517 = vperm.xlu2 %1167, %v1380_v16  }
  0x72   : > { %513 = vperm.xlu1 %1166, %v243_v13   ;;  %1169 = vset.pattern.permute.xlu0 %v1257_v18 }
  0x73   : > { %667 = vperm.xlu0 %1169, %v229_v3  }
  0x79   : > { %1171 = vset.pattern.permute.xlu2 %v1257_v18 }
  0x7a   : > { %1170 = vset.pattern.permute.xlu1 %v1257_v18  ;;  %v269_v20 = vpop.permute.xlu2 %268  ;;  %675 = vperm.xlu2 %1171, %v231_v2  }
  0x7b   : > { %v331_v21 = vsub.f32 %v269_v20, %v1386_v19  ;;  %671 = vperm.xlu1 %1170, %v230_v6   ;;  %687 = vperm.xlu0 %1169, %v234_v4  }
  0x7d   : > { %v1053_v40 = vadd.f32 -5.0, %v331_v21  ;;  %vm347_vm1 = vcmp.ge.f32.partialorder %v331_v21, 2.5 }
  0x7f   : > { %v379_v50 = vsel %vm347_vm1, %v1053_v40, %v331_v21 }
  0x80   : > { %vm395_vm6 = vcmp.lt.f32.partialorder %v379_v50, -2.5  ;;  %v411_v55 = vadd.f32 5.0, %v379_v50 }
  0x82   : > { %v274_v22 = vpop.permute.xlu2 %273  ;;  %683 = vperm.xlu2 %1171, %v1362_v1  }
  0x83   : > { %v332_v23 = vsub.f32 %v274_v22, %v1386_v19  ;;  %679 = vperm.xlu1 %1170, %v232_v5   ;;  %699 = vperm.xlu0 %1169, %v237_v7  }
  0x85   : > { %v1054_v41 = vadd.f32 -5.0, %v332_v23  ;;  %vm348_vm2 = vcmp.ge.f32.partialorder %v332_v23, 2.5 }
  0x87   : > { %v380_v52 = vsel %vm348_vm2, %v1054_v41, %v332_v23 }
  0x88   : > { %v412_v57 = vadd.f32 5.0, %v380_v52  ;;  %vm396_vm8 = vcmp.lt.f32.partialorder %v380_v52, -2.5 }
  0x8a   : > { %v289_v24 = vpop.permute.xlu2 %288  ;;  %695 = vperm.xlu2 %1171, %v236_v8  }
  0x8b   : > { %v335_v25 = vsub.f32 %v289_v24, %v1386_v19  ;;  %691 = vperm.xlu1 %1170, %v235_v9   ;;  %711 = vperm.xlu0 %1169, %v240_v10   ;;  %v427_v9 = vsel %vm395_vm6, %v411_v55, %v379_v50  ;;  %v428_v10 = vsel %vm396_vm8, %v412_v57, %v380_v52 }
  0x8c   : > { %v443_v17 = vmul.f32 %v427_v9, %v427_v9  ;;  %v1435_v18 = vmul.f32 %v428_v10, %v428_v10 }
  0x8d   : > { %v1057_v44 = vadd.f32 -5.0, %v335_v25  ;;  %vm351_vm3 = vcmp.ge.f32.partialorder %v335_v25, 2.5 }
  0x8f   : > { %v383_v54 = vsel %vm351_vm3, %v1057_v44, %v335_v25 }
  0x90   : > { %vm399_vm9 = vcmp.lt.f32.partialorder %v383_v54, -2.5  ;;  %v415_v60 = vadd.f32 5.0, %v383_v54 }
  0x92   : > { %v304_v26 = vpop.permute.xlu2 %303  ;;  %v259_v27 = vpop.permute.xlu1 %258  ;;  %707 = vperm.xlu2 %1171, %v239_v11  }
  0x93   : > { %v1393_v28 = vsub.f32 %v304_v26, %v1386_v19  ;;  %v1396_v29 = vsub.f32 %v259_v27, %v1386_v19  ;;  %703 = vperm.xlu1 %1170, %v238_v12   ;;  %723 = vperm.xlu0 %1169, %v243_v13   ;;  %v249_v30 = vpop.permute.xlu0 %248  ;;  %v431_v12 = vsel %vm399_vm9, %v415_v60, %v383_v54 }
  0x94   : > { %v1399_v31 = vsub.f32 %v249_v30, %v1386_v19  ;;  %v1439_v21 = vmul.f32 %v431_v12, %v431_v12 }
  0x95   : > { %vm354_vm10 = vcmp.ge.f32.partialorder %v1393_v28, 2.5  ;;  %v1060_v62 = vadd.f32 -5.0, %v1393_v28  ;;  %v1051_v63 = vadd.f32 -5.0, %v1396_v29  ;;  %vm345_vm11 = vcmp.ge.f32.partialorder %v1396_v29, 2.5 }
  0x96   : > { %vm343_vm14 = vcmp.ge.f32.partialorder %v1399_v31, 2.5 }
  0x97   : > { %v377_v20 = vsel %vm345_vm11, %v1051_v63, %v1396_v29 }
  0x9a   : > { %v319_v32 = vpop.permute.xlu2 %318  ;;  %v264_v33 = vpop.permute.xlu1 %263  ;;  %719 = vperm.xlu2 %1171, %v242_v14   ;;  %v386_v14 = vsel %vm354_vm10, %v1060_v62, %v1393_v28  ;;  %v409_v28 = vadd.f32 5.0, %v377_v20 }
  0x9b   : > { %v1402_v34 = vsub.f32 %v319_v32, %v1386_v19  ;;  %v1405_v35 = vsub.f32 %v264_v33, %v1386_v19  ;;  %715 = vperm.xlu1 %1170, %v241_v15   ;;  %v254_v36 = vpop.permute.xlu0 %253  ;;  %v1049_v15 = vadd.f32 -5.0, %v1399_v31  ;;  %vm402_vm15 = vcmp.lt.f32.partialorder %v386_v14, -2.5 }
  0x9c   : > { %v328_v37 = vsub.f32 %v254_v36, %v1386_v19  ;;  %v418_v27 = vadd.f32 5.0, %v386_v14 }
  0x9d   : > { %v1052_v22 = vadd.f32 -5.0, %v1405_v35  ;;  %v375_v30 = vsel %vm343_vm14, %v1049_v15, %v1399_v31 }
  0x9e   : > { %v1050_v38 = vadd.f32 -5.0, %v328_v37  ;;  %vm344_vm0 = vcmp.ge.f32.partialorder %v328_v37, 2.5 }
  0xa0   : > { %v376_v42 = vsel %vm344_vm0, %v1050_v38, %v328_v37  ;;  %vm346_vm0 = vcmp.ge.f32.partialorder %v1405_v35, 2.5 }
  0xa1   : > { %v408_v51 = vadd.f32 5.0, %v376_v42  ;;  %vm392_vm4 = vcmp.lt.f32.partialorder %v376_v42, -2.5  ;;  %v378_v41 = vsel %vm346_vm0, %v1052_v22, %v1405_v35 }
  0xa2   : > { %v284_v43 = vpop.permute.xlu1 %283  ;;  %v410_v50 = vadd.f32 5.0, %v378_v41  ;;  %vm394_vm9 = vcmp.lt.f32.partialorder %v378_v41, -2.5 }
  0xa3   : > { %v1412_v45 = vsub.f32 %v284_v43, %v1386_v19  ;;  %727 = vperm.xlu1 %1170, %v1380_v16   ;;  %v279_v46 = vpop.permute.xlu0 %278  ;;  %v462_v47 = vpop.permute.xlu2 %461  ;;  %v424_v58 = vsel %vm392_vm4, %v408_v51, %v376_v42 }
  0xa4   : > { %v333_v48 = vsub.f32 %v279_v46, %v1386_v19  ;;  %v522_v49 = vsub.f32 %v462_v47, %v1409_v39  ;;  %v440_v5 = vmul.f32 %v424_v58, %v424_v58  ;;  %v407_v46 = vadd.f32 5.0, %v375_v30 }
  0xa5   : > { %v1056_v44 = vadd.f32 -5.0, %v1412_v45  ;;  %vm350_vm6 = vcmp.ge.f32.partialorder %v1412_v45, 2.5 }
  0xa6   : > { %vm538_vm5 = vcmp.ge.f32.partialorder %v522_v49, 2.5  ;;  %v1066_v53 = vadd.f32 -5.0, %v522_v49  ;;  %v1055_v11 = vadd.f32 -5.0, %v333_v48  ;;  %vm349_vm12 = vcmp.ge.f32.partialorder %v333_v48, 2.5 }
  0xa7   : > { %v382_v54 = vsel %vm350_vm6, %v1056_v44, %v1412_v45 }
  0xa8   : > { %v570_v56 = vsel %vm538_vm5, %v1066_v53, %v522_v49  ;;  %v381_v23 = vsel %vm349_vm12, %v1055_v11, %v333_v48  ;;  %vm393_vm5 = vcmp.lt.f32.partialorder %v377_v20, -2.5  ;;  %v1455_v48 = vsel %vm402_vm15, %v418_v27, %v386_v14 }
  0xa9   : > { %vm586_vm7 = vcmp.lt.f32.partialorder %v570_v56, -2.5  ;;  %v602_v59 = vadd.f32 5.0, %v570_v56  ;;  %v413_v36 = vadd.f32 5.0, %v381_v23  ;;  %vm397_vm2 = vcmp.lt.f32.partialorder %v381_v23, -2.5 }
  0xaa   : > { %v299_v61 = vpop.permute.xlu1 %298  ;;  %v425_v53 = vsel %vm393_vm5, %v409_v28, %v377_v20  ;;  %vm398_vm12 = vcmp.lt.f32.partialorder %v382_v54, -2.5 }
  0xab   : > { %v618_v1 = vsel %vm586_vm7, %v602_v59, %v570_v56  ;;  %v1421_v2 = vsub.f32 %v299_v61, %v1386_v19  ;;  %v294_v3 = vpop.permute.xlu0 %293  ;;  %v474_v4 = vpop.permute.xlu2 %473  ;;  %vm391_vm7 = vcmp.lt.f32.partialorder %v375_v30, -2.5  ;;  %v429_v49 = vsel %vm397_vm2, %v413_v36, %v381_v23 }
  0xac   : > { %v634_v6 = vmul.f32 %v618_v1, %v618_v1  ;;  %v336_v7 = vsub.f32 %v294_v3, %v1386_v19  ;;  %v525_v8 = vsub.f32 %v474_v4, %v1409_v39  ;;  %v423_v56 = vsel %vm391_vm7, %v407_v46, %v375_v30 }
  0xad   : > { %v445_v57 = vmul.f32 %v429_v49, %v429_v49  ;;  %v426_v4 = vsel %vm394_vm9, %v410_v50, %v378_v41  ;;  %v439_v11 = vmul.f32 %v423_v56, %v423_v56 }
  0xae   : > { %v1429_v13 = vadd.f32 %v634_v6, %v440_v5  ;;  %vm541_vm13 = vcmp.ge.f32.partialorder %v525_v8, 2.5  ;;  %v1069_v16 = vadd.f32 -5.0, %v525_v8  ;;  %v1058_v42 = vadd.f32 -5.0, %v336_v7 }
  0xaf   : > { %vm352_vm3 = vcmp.ge.f32.partialorder %v336_v7, 2.5  ;;  %v414_v5 = vadd.f32 5.0, %v382_v54  ;;  %v1468_v12 = vmul.f32 %v426_v4, %v426_v4 }
  0xb0   : > { %v573_v24 = vsel %vm541_vm13, %v1069_v16, %v525_v8  ;;  %v384_v51 = vsel %vm352_vm3, %v1058_v42, %v336_v7  ;;  %v1463_v8 = vmul.f32 %v425_v53, %v425_v53  ;;  %vm353_vm3 = vcmp.ge.f32.partialorder %v1421_v2, 2.5 }
  0xb1   : > { %vm589_vm1 = vcmp.lt.f32.partialorder %v573_v24, -2.5  ;;  %v605_v25 = vadd.f32 5.0, %v573_v24  ;;  %v416_v61 = vadd.f32 5.0, %v384_v51  ;;  %vm400_vm11 = vcmp.lt.f32.partialorder %v384_v51, -2.5 }
  0xb2   : > { %v314_v26 = vpop.permute.xlu1 %313  ;;  %v1470_v15 = vsel %vm398_vm12, %v414_v5, %v382_v54 }
  0xb3   : > { %v1445_v29 = vsub.f32 %v314_v26, %v1386_v19  ;;  %v309_v32 = vpop.permute.xlu0 %308  ;;  %v482_v33 = vpop.permute.xlu2 %481  ;;  %v621_v37 = vsel %vm589_vm1, %v605_v25, %v573_v24  ;;  %v432_v14 = vsel %vm400_vm11, %v416_v61, %v384_v51  ;;  %v1059_v24 = vadd.f32 -5.0, %v1421_v2 }
  0xb4   : > { %v339_v38 = vsub.f32 %v309_v32, %v1386_v19  ;;  %v527_v40 = vsub.f32 %v482_v33, %v1409_v39  ;;  %v637_v43 = vmul.f32 %v621_v37, %v621_v37  ;;  %v448_v25 = vmul.f32 %v432_v14, %v432_v14 }
  0xb5   : > { %v1483_v51 = vsel %vm353_vm3, %v1059_v24, %v1421_v2 }
  0xb6   : > { %vm543_vm4 = vcmp.ge.f32.partialorder %v527_v40, 2.5  ;;  %v1071_v31 = vadd.f32 -5.0, %v527_v40  ;;  %v1452_v47 = vadd.f32 %v637_v43, %v443_v17  ;;  %v1061_v55 = vadd.f32 -5.0, %v339_v38 }
  0xb7   : > { %vm355_vm10 = vcmp.ge.f32.partialorder %v339_v38, 2.5 }
  0xb8   : > { %v575_v35 = vsel %vm543_vm4, %v1071_v31, %v527_v40  ;;  %v387_v45 = vsel %vm355_vm10, %v1061_v55, %v339_v38 }
  0xb9   : > { %vm591_vm8 = vcmp.lt.f32.partialorder %v575_v35, -2.5  ;;  %v607_v52 = vadd.f32 5.0, %v575_v35  ;;  %v419_v16 = vadd.f32 5.0, %v387_v45  ;;  %vm403_vm1 = vcmp.lt.f32.partialorder %v387_v45, -2.5 }
  0xbb   : > { %v623_v58 = vsel %vm591_vm8, %v607_v52, %v575_v35  ;;  %v324_v59 = vpop.permute.xlu0 %323  ;;  %v494_v60 = vpop.permute.xlu2 %493  ;;  %v435_v42 = vsel %vm403_vm1, %v419_v16, %v387_v45  ;;  %v446_v16 = vmul.f32 %v1470_v15, %v1470_v15 }
  0xbc   : > { %v639_v62 = vmul.f32 %v623_v58, %v623_v58  ;;  %v342_v63 = vsub.f32 %v324_v59, %v1386_v19  ;;  %v530_v1 = vsub.f32 %v494_v60, %v1409_v39  ;;  %v458_v3 = vpop.permute.xlu1 %457  ;;  %v1466_v19 = vadd.f32 -5.0, %v1402_v34 }
  0xbd   : > { %v521_v6 = vsub.f32 %v458_v3, %v1409_v39  ;;  %v451_v54 = vmul.f32 %v435_v42, %v435_v42 }
  0xbe   : > { %v1461_v7 = vadd.f32 %v639_v62, %v445_v57  ;;  %vm546_vm13 = vcmp.ge.f32.partialorder %v530_v1, 2.5  ;;  %v1074_v9 = vadd.f32 -5.0, %v530_v1  ;;  %vm358_vm2 = vcmp.ge.f32.partialorder %v342_v63, 2.5 }
  0xbf   : > { %vm537_vm14 = vcmp.ge.f32.partialorder %v521_v6, 2.5  ;;  %v1065_v10 = vadd.f32 -5.0, %v521_v6  ;;  %v1064_v27 = vadd.f32 -5.0, %v342_v63 }
  0xc0   : > { %v578_v17 = vsel %vm546_vm13, %v1074_v9, %v530_v1 }
  0xc1   : > { %v569_v20 = vsel %vm537_vm14, %v1065_v10, %v521_v6  ;;  %vm594_vm15 = vcmp.lt.f32.partialorder %v578_v17, -2.5  ;;  %v610_v22 = vadd.f32 5.0, %v578_v17  ;;  %v390_v49 = vsel %vm358_vm2, %v1064_v27, %v342_v63 }
  0xc2   : > { %vm585_vm0 = vcmp.lt.f32.partialorder %v569_v20, -2.5  ;;  %v601_v23 = vadd.f32 5.0, %v569_v20  ;;  %vm406_vm9 = vcmp.lt.f32.partialorder %v390_v49, -2.5  ;;  %v422_v60 = vadd.f32 5.0, %v390_v49 }
  0xc3   : > { %v506_v26 = vpop.permute.xlu2 %505  ;;  %v626_v28 = vsel %vm594_vm15, %v610_v22, %v578_v17  ;;  %vm401_vm15 = vcmp.lt.f32.partialorder %v1483_v51, -2.5  ;;  %vm356_vm2 = vcmp.ge.f32.partialorder %v1445_v29, 2.5 }
  0xc4   : > { %v617_v30 = vsel %vm585_vm0, %v601_v23, %v569_v20  ;;  %v533_v32 = vsub.f32 %v506_v26, %v1409_v39  ;;  %v470_v33 = vpop.permute.xlu1 %469  ;;  %v466_v36 = vpop.permute.xlu0 %465  ;;  %v642_v37 = vmul.f32 %v626_v28, %v626_v28  ;;  %v438_v23 = vsel %vm406_vm9, %v422_v60, %v390_v49  ;;  %v1500_v26 = vld [vmem:[%s1359_s0 + $0x2] ss:$0 sm:$0xff] }
  0xc5   : > { %v633_v38 = vmul.f32 %v617_v30, %v617_v30  ;;  %v524_v40 = vsub.f32 %v470_v33, %v1409_v39  ;;  %v523_v41 = vsub.f32 %v466_v36, %v1409_v39  ;;  %v417_v28 = vadd.f32 5.0, %v1483_v51 }
  0xc6   : > { %vm549_vm4 = vcmp.ge.f32.partialorder %v533_v32, 2.5  ;;  %v1077_v43 = vadd.f32 -5.0, %v533_v32  ;;  %v1477_v44 = vadd.f32 %v642_v37, %v448_v25  ;;  %v1062_v30 = vadd.f32 -5.0, %v1445_v29 }
  0xc7   : > { %v1479_v31 = vadd.f32 %v633_v38, %v439_v11  ;;  %vm540_vm5 = vcmp.ge.f32.partialorder %v524_v40, 2.5  ;;  %v1068_v46 = vadd.f32 -5.0, %v524_v40  ;;  %vm539_vm6 = vcmp.ge.f32.partialorder %v523_v41, 2.5 }
  0xc8   : > { %v581_v35 = vsel %vm549_vm4, %v1077_v43, %v533_v32  ;;  %v1067_v50 = vadd.f32 -5.0, %v523_v41  ;;  %v454_v32 = vmul.f32 %v438_v23, %v438_v23 }
  0xc9   : > { %vm597_vm7 = vcmp.lt.f32.partialorder %v581_v35, -2.5  ;;  %v613_v52 = vadd.f32 5.0, %v581_v35  ;;  %v572_v53 = vsel %vm540_vm5, %v1068_v46, %v524_v40 }
  0xca   : > { %vm588_vm8 = vcmp.lt.f32.partialorder %v572_v53, -2.5  ;;  %v604_v55 = vadd.f32 5.0, %v572_v53  ;;  %v571_v56 = vsel %vm539_vm6, %v1067_v50, %v523_v41  ;;  %vm357_vm6 = vcmp.ge.f32.partialorder %v1402_v34, 2.5 }
  0xcb   : > { %v629_v57 = vsel %vm597_vm7, %v613_v52, %v581_v35  ;;  %vm587_vm10 = vcmp.lt.f32.partialorder %v571_v56, -2.5  ;;  %v603_v58 = vadd.f32 5.0, %v571_v56  ;;  %v518_v59 = vpop.permute.xlu2 %517 }
  0xcc   : > { %v645_v61 = vmul.f32 %v629_v57, %v629_v57  ;;  %v620_v62 = vsel %vm588_vm8, %v604_v55, %v572_v53  ;;  %v536_v63 = vsub.f32 %v518_v59, %v1409_v39  ;;  %v478_v1 = vpop.permute.xlu1 %477  ;;  %v486_v2 = vpop.permute.xlu0 %485  ;;  %v433_v57 = vsel %vm401_vm15, %v417_v28, %v1483_v51 }
  0xcd   : > { %v636_v3 = vmul.f32 %v620_v62, %v620_v62  ;;  %v619_v4 = vsel %vm587_vm10, %v603_v58, %v571_v56  ;;  %v526_v5 = vsub.f32 %v478_v1, %v1409_v39  ;;  %v528_v6 = vsub.f32 %v486_v2, %v1409_v39 }
  0xce   : > { %v1488_v45 = vadd.f32 %v645_v61, %v451_v54  ;;  %v635_v9 = vmul.f32 %v619_v4, %v619_v4  ;;  %vm552_vm11 = vcmp.ge.f32.partialorder %v536_v63, 2.5  ;;  %v1080_v10 = vadd.f32 -5.0, %v536_v63 }
  0xcf   : > { %v1491_v11 = vadd.f32 %v636_v3, %v1468_v12  ;;  %vm542_vm12 = vcmp.ge.f32.partialorder %v526_v5, 2.5  ;;  %v1070_v14 = vadd.f32 -5.0, %v526_v5  ;;  %vm544_vm13 = vcmp.ge.f32.partialorder %v528_v6, 2.5 }
  0xd0   : > { %v1496_v17 = vadd.f32 %v635_v9, %v1463_v8  ;;  %v584_v20 = vsel %vm552_vm11, %v1080_v10, %v536_v63  ;;  %v1072_v22 = vadd.f32 -5.0, %v528_v6  ;;  %v388_v58 = vsel %vm356_vm2, %v1062_v30, %v1445_v29 }
  0xd1   : > { %vm600_vm14 = vcmp.lt.f32.partialorder %v584_v20, -2.5  ;;  %v616_v24 = vadd.f32 5.0, %v584_v20  ;;  %v574_v25 = vsel %vm542_vm12, %v1070_v14, %v526_v5  ;;  %v389_v1 = vsel %vm357_vm6, %v1466_v19, %v1402_v34 }
  0xd2   : > { %vm590_vm0 = vcmp.lt.f32.partialorder %v574_v25, -2.5  ;;  %v606_v12 = vadd.f32 5.0, %v574_v25  ;;  %v576_v27 = vsel %vm544_vm13, %v1072_v22, %v528_v6  ;;  %v449_v2 = vmul.f32 %v433_v57, %v433_v57 }
  0xd3   : > { %v632_v15 = vsel %vm600_vm14, %v616_v24, %v584_v20  ;;  %vm592_vm1 = vcmp.lt.f32.partialorder %v576_v27, -2.5  ;;  %v608_v8 = vadd.f32 5.0, %v576_v27  ;;  %v420_v3 = vadd.f32 5.0, %v388_v58 }
  0xd4   : > { %v648_v33 = vmul.f32 %v632_v15, %v632_v15  ;;  %v622_v36 = vsel %vm590_vm0, %v606_v12, %v574_v25  ;;  %v490_v37 = vpop.permute.xlu1 %489  ;;  %v498_v38 = vpop.permute.xlu0 %497  ;;  %vm404_vm10 = vcmp.lt.f32.partialorder %v388_v58, -2.5  ;;  %vm405_vm15 = vcmp.lt.f32.partialorder %v389_v1, -2.5 }
  0xd5   : > { %v638_v40 = vmul.f32 %v622_v36, %v622_v36  ;;  %v624_v41 = vsel %vm592_vm1, %v608_v8, %v576_v27  ;;  %v529_v42 = vsub.f32 %v490_v37, %v1409_v39  ;;  %v531_v43 = vsub.f32 %v498_v38, %v1409_v39  ;;  %v676_v46 = vpop.permute.xlu2 %675 }
  0xd6   : > { %v1508_v49 = vadd.f32 %v648_v33, %v454_v32  ;;  %v640_v35 = vmul.f32 %v624_v41, %v624_v41  ;;  %v733_v50 = vsub.f32 %v676_v46, %v1500_v26  ;;  %v450_v27 = vmul.f32 %v1455_v48, %v1455_v48 }
  0xd7   : > { %v1512_v52 = vadd.f32 %v638_v40, %v1435_v18  ;;  %vm545_vm3 = vcmp.ge.f32.partialorder %v529_v42, 2.5  ;;  %v1073_v53 = vadd.f32 -5.0, %v529_v42  ;;  %vm547_vm4 = vcmp.ge.f32.partialorder %v531_v43, 2.5 }
  0xd8   : > { %v1514_v54 = vadd.f32 %v640_v35, %v446_v16  ;;  %v1075_v55 = vadd.f32 -5.0, %v531_v43  ;;  %vm749_vm5 = vcmp.ge.f32.partialorder %v733_v50, 2.5  ;;  %v1083_v56 = vadd.f32 -5.0, %v733_v50 }
  0xd9   : > { %v577_v59 = vsel %vm545_vm3, %v1073_v53, %v529_v42  ;;  %v436_v8 = vsel %vm404_vm10, %v420_v3, %v388_v58  ;;  %v421_v36 = vadd.f32 5.0, %v389_v1 }
  0xda   : > { %vm593_vm7 = vcmp.lt.f32.partialorder %v577_v59, -2.5  ;;  %v609_v18 = vadd.f32 5.0, %v577_v59  ;;  %v579_v60 = vsel %vm547_vm4, %v1075_v55, %v531_v43  ;;  %v781_v61 = vsel %vm749_vm5, %v1083_v56, %v733_v50 }
  0xdb   : > { %vm595_vm8 = vcmp.lt.f32.partialorder %v579_v60, -2.5  ;;  %v611_v62 = vadd.f32 5.0, %v579_v60  ;;  %vm797_vm9 = vcmp.lt.f32.partialorder %v781_v61, -2.5  ;;  %v813_v63 = vadd.f32 5.0, %v781_v61 }
  0xdc   : > { %v625_v4 = vsel %vm593_vm7, %v609_v18, %v577_v59  ;;  %v502_v5 = vpop.permute.xlu1 %501  ;;  %v510_v6 = vpop.permute.xlu0 %509  ;;  %v452_v40 = vmul.f32 %v436_v8, %v436_v8 }
  0xdd   : > { %v641_v51 = vmul.f32 %v625_v4, %v625_v4  ;;  %v627_v9 = vsel %vm595_vm8, %v611_v62, %v579_v60  ;;  %v829_v29 = vsel %vm797_vm9, %v813_v63, %v781_v61  ;;  %v532_v10 = vsub.f32 %v502_v5, %v1409_v39  ;;  %v684_v14 = vpop.permute.xlu2 %683 }
  0xde   : > { %v643_v16 = vmul.f32 %v627_v9, %v627_v9  ;;  %v845_v20 = vmul.f32 %v829_v29, %v829_v29  ;;  %v534_v22 = vsub.f32 %v510_v6, %v1409_v39  ;;  %v735_v23 = vsub.f32 %v684_v14, %v1500_v26 }
  0xdf   : > { %v1527_v34 = vadd.f32 %v641_v51, %v1439_v21  ;;  %vm548_vm11 = vcmp.ge.f32.partialorder %v532_v10, 2.5  ;;  %v1076_v19 = vadd.f32 -5.0, %v532_v10  ;;  %v437_v62 = vsel %vm405_vm15, %v421_v36, %v389_v1 }
  0xe0   : > { %v1529_v24 = vadd.f32 %v643_v16, %v449_v2  ;;  %v1532_v25 = vadd.f32 %v845_v20, %v1496_v17  ;;  %vm550_vm12 = vcmp.ge.f32.partialorder %v534_v22, 2.5  ;;  %v1078_v12 = vadd.f32 -5.0, %v534_v22 }
  0xe1   : > { %v580_v28 = vsel %vm548_vm11, %v1076_v19, %v532_v10  ;;  %vm751_vm13 = vcmp.ge.f32.partialorder %v735_v23, 2.5  ;;  %v1085_v15 = vadd.f32 -5.0, %v735_v23  ;;  %v453_v51 = vmul.f32 %v437_v62, %v437_v62 }
  0xe2   : > { %vm596_vm14 = vcmp.lt.f32.partialorder %v580_v28, -2.5  ;;  %v612_v30 = vadd.f32 5.0, %v580_v28  ;;  %v582_v21 = vsel %vm550_vm12, %v1078_v12, %v534_v22 }
  0xe3   : > { %vm598_vm0 = vcmp.lt.f32.partialorder %v582_v21, -2.5  ;;  %v614_v32 = vadd.f32 5.0, %v582_v21  ;;  %v783_v33 = vsel %vm751_vm13, %v1085_v15, %v735_v23 }
  0xe4   : > { %v628_v37 = vsel %vm596_vm14, %v612_v30, %v580_v28  ;;  %vm799_vm1 = vcmp.lt.f32.partialorder %v783_v33, -2.5  ;;  %v815_v17 = vadd.f32 5.0, %v783_v33  ;;  %v514_v38 = vpop.permute.xlu1 %513 }
  0xe5   : > { %v644_v41 = vmul.f32 %v628_v37, %v628_v37  ;;  %v630_v42 = vsel %vm598_vm0, %v614_v32, %v582_v21  ;;  %v535_v48 = vsub.f32 %v514_v38, %v1409_v39  ;;  %v696_v43 = vpop.permute.xlu2 %695  ;;  %v668_v46 = vpop.permute.xlu0 %667 }
  0xe6   : > { %v646_v35 = vmul.f32 %v630_v42, %v630_v42  ;;  %v831_v50 = vsel %vm799_vm1, %v815_v17, %v783_v33  ;;  %v738_v53 = vsub.f32 %v696_v43, %v1500_v26  ;;  %v731_v55 = vsub.f32 %v668_v46, %v1500_v26 }
  0xe7   : > { %v1539_v56 = vadd.f32 %v644_v41, %v450_v27  ;;  %v847_v57 = vmul.f32 %v831_v50, %v831_v50  ;;  %vm551_vm2 = vcmp.ge.f32.partialorder %v535_v48, 2.5  ;;  %v1079_v58 = vadd.f32 -5.0, %v535_v48 }
  0xe8   : > { %v1541_v59 = vadd.f32 %v646_v35, %v452_v40  ;;  %vm754_vm3 = vcmp.ge.f32.partialorder %v738_v53, 2.5  ;;  %v1088_v18 = vadd.f32 -5.0, %v738_v53  ;;  %vm747_vm4 = vcmp.ge.f32.partialorder %v731_v55, 2.5 }
  0xe9   : > { %v1544_v39 = vadd.f32 %v847_v57, %v1452_v47  ;;  %v583_v60 = vsel %vm551_vm2, %v1079_v58, %v535_v48  ;;  %v1081_v61 = vadd.f32 -5.0, %v731_v55 }
  0xea   : > { %vm599_vm5 = vcmp.lt.f32.partialorder %v583_v60, -2.5  ;;  %v615_v63 = vadd.f32 5.0, %v583_v60  ;;  %v786_v2 = vsel %vm754_vm3, %v1088_v18, %v738_v53 }
  0xeb   : > { %vm802_vm6 = vcmp.lt.f32.partialorder %v786_v2, -2.5  ;;  %v818_v3 = vadd.f32 5.0, %v786_v2  ;;  %v779_v4 = vsel %vm747_vm4, %v1081_v61, %v731_v55  ;;  %vm879_vm14 = vcmp.lt.f32.partialorder %v1544_v39, 9.0 }
  0xec   : > { %v631_v5 = vsel %vm599_vm5, %v615_v63, %v583_v60  ;;  %vm795_vm7 = vcmp.lt.f32.partialorder %v779_v4, -2.5  ;;  %v811_v6 = vadd.f32 5.0, %v779_v4 }
  0xed   : > { %v647_v9 = vmul.f32 %v631_v5, %v631_v5  ;;  %v834_v29 = vsel %vm802_vm6, %v818_v3, %v786_v2  ;;  %v708_v10 = vpop.permute.xlu2 %707  ;;  %v672_v14 = vpop.permute.xlu1 %671 }
  0xee   : > { %v850_v47 = vmul.f32 %v834_v29, %v834_v29  ;;  %v827_v16 = vsel %vm795_vm7, %v811_v6, %v779_v4  ;;  %v741_v20 = vsub.f32 %v708_v10, %v1500_v26  ;;  %v732_v1 = vsub.f32 %v672_v14, %v1500_v26  ;;  %v688_v22 = vpop.permute.xlu0 %687 }
  0xef   : > { %v1549_v23 = vadd.f32 %v647_v9, %v453_v51  ;;  %v843_v19 = vmul.f32 %v827_v16, %v827_v16  ;;  %v736_v12 = vsub.f32 %v688_v22, %v1500_v26 }
  0xf0   : > { %v1553_v27 = vadd.f32 %v850_v47, %v1514_v54  ;;  %vm757_vm8 = vcmp.ge.f32.partialorder %v741_v20, 2.5  ;;  %v1091_v28 = vadd.f32 -5.0, %v741_v20  ;;  %vm748_vm9 = vcmp.ge.f32.partialorder %v732_v1, 2.5 }
  0xf1   : > { %v859_v15 = vadd.f32 %v843_v19, %v1479_v31  ;;  %v1082_v8 = vadd.f32 -5.0, %v732_v1  ;;  %vm752_vm10 = vcmp.ge.f32.partialorder %v736_v12, 2.5  ;;  %v1086_v30 = vadd.f32 -5.0, %v736_v12 }
  0xf2   : > { %v789_v21 = vsel %vm757_vm8, %v1091_v28, %v741_v20 }
  0xf3   : > { %vm805_vm11 = vcmp.lt.f32.partialorder %v789_v21, -2.5  ;;  %v821_v32 = vadd.f32 5.0, %v789_v21  ;;  %v780_v33 = vsel %vm748_vm9, %v1082_v8, %v732_v1  ;;  %v784_v37 = vsel %vm752_vm10, %v1086_v30, %v736_v12 }
  0xf4   : > { %vm796_vm12 = vcmp.lt.f32.partialorder %v780_v33, -2.5  ;;  %v812_v36 = vadd.f32 5.0, %v780_v33  ;;  %vm800_vm13 = vcmp.lt.f32.partialorder %v784_v37, -2.5  ;;  %v816_v38 = vadd.f32 5.0, %v784_v37 }
  0xf5   : > { %v837_v17 = vsel %vm805_vm11, %v821_v32, %v789_v21  ;;  %v720_v54 = vpop.permute.xlu2 %719  ;;  %v680_v40 = vpop.permute.xlu1 %679  ;;  %vm875_vm2 = vcmp.lt.f32.partialorder %v859_v15, 9.0 }
  0xf6   : > { %v853_v41 = vmul.f32 %v837_v17, %v837_v17  ;;  %v828_v42 = vsel %vm796_vm12, %v812_v36, %v780_v33  ;;  %v744_v48 = vsub.f32 %v720_v54, %v1500_v26  ;;  %v734_v31 = vsub.f32 %v680_v40, %v1500_v26  ;;  %v700_v43 = vpop.permute.xlu0 %699 }
  0xf7   : > { %v844_v46 = vmul.f32 %v828_v42, %v828_v42  ;;  %v832_v35 = vsel %vm800_vm13, %v816_v38, %v784_v37  ;;  %v739_v50 = vsub.f32 %v700_v43, %v1500_v26  ;;  %vm877_vm12 = vcmp.lt.f32.partialorder %v1532_v25, 9.0 }
  0xf8   : > { %v1561_v53 = vadd.f32 %v853_v41, %v1529_v24  ;;  %v848_v55 = vmul.f32 %v832_v35, %v832_v35  ;;  %vm760_vm15 = vcmp.ge.f32.partialorder %v744_v48, 2.5  ;;  %v1094_v57 = vadd.f32 -5.0, %v744_v48 }
  0xf9   : > { %v860_v58 = vadd.f32 %v844_v46, %v1429_v13  ;;  %vm750_vm0 = vcmp.ge.f32.partialorder %v734_v31, 2.5  ;;  %v1084_v18 = vadd.f32 -5.0, %v734_v31  ;;  %vm755_vm1 = vcmp.ge.f32.partialorder %v739_v50, 2.5 }
  0xfa   : > { %v864_v60 = vadd.f32 %v848_v55, %v1512_v52  ;;  %v792_v61 = vsel %vm760_vm15, %v1094_v57, %v744_v48  ;;  %v1089_v62 = vadd.f32 -5.0, %v739_v50 }
  0xfb   : > { %vm876_vm3 = vcmp.lt.f32.partialorder %v860_v58, 9.0  ;;  %vm808_vm4 = vcmp.lt.f32.partialorder %v792_v61, -2.5  ;;  %v824_v63 = vadd.f32 5.0, %v792_v61  ;;  %v782_v2 = vsel %vm750_vm0, %v1084_v18, %v734_v31 }
  0xfc   : > { %vm1565_vm5 = vmpackc.low %vm876_vm3, %vm875_vm2  ;;  %vm880_vm6 = vcmp.lt.f32.partialorder %v864_v60, 9.0  ;;  %vm798_vm7 = vcmp.lt.f32.partialorder %v782_v2, -2.5  ;;  %v814_v3 = vadd.f32 5.0, %v782_v2  ;;  %v787_v13 = vsel %vm755_vm1, %v1089_v62, %v739_v50 }
  0xfd   : > { %vm1571_vm8 = vmpackc.low %vm880_vm6, %vm879_vm14  ;;  %v840_v52 = vsel %vm808_vm4, %v824_v63, %v792_v61  ;;  %vm803_vm9 = vcmp.lt.f32.partialorder %v787_v13, -2.5  ;;  %v819_v5 = vadd.f32 5.0, %v787_v13  ;;  %v692_v6 = vpop.permute.xlu1 %691  ;;  %vm882_vm4 = vcmp.lt.f32.partialorder %v1553_v27, 9.0 }
  0xfe   : > { %v856_v51 = vmul.f32 %v840_v52, %v840_v52  ;;  %v830_v9 = vsel %vm798_vm7, %v814_v3, %v782_v2  ;;  %v737_v29 = vsub.f32 %v692_v6, %v1500_v26  ;;  %v712_v10 = vpop.permute.xlu0 %711 }
  0xff   : > { %v846_v14 = vmul.f32 %v830_v9, %v830_v9  ;;  %v835_v47 = vsel %vm803_vm9, %v819_v5, %v787_v13  ;;  %v742_v16 = vsub.f32 %v712_v10, %v1500_v26 }
 0x100   : > { %v1578_v39 = vadd.f32 %v856_v51, %v1541_v59  ;;  %v851_v20 = vmul.f32 %v835_v47, %v835_v47  ;;  %vm753_vm10 = vcmp.ge.f32.partialorder %v737_v29, 2.5  ;;  %v1087_v1 = vadd.f32 -5.0, %v737_v29 }
 0x101   : > { %v862_v22 = vadd.f32 %v846_v14, %v1491_v11  ;;  %vm758_vm11 = vcmp.ge.f32.partialorder %v742_v16, 2.5  ;;  %v1092_v19 = vadd.f32 -5.0, %v742_v16  ;;  %v893_v11 = vsel %vm1565_vm5, 16711935, %v1255_v0 }
 0x102   : > { %v1584_v12 = vadd.f32 %v851_v20, %v1527_v34  ;;  %v785_v28 = vsel %vm753_vm10, %v1087_v1, %v737_v29  ;;  %vm885_vm5 = vcmp.lt.f32.partialorder %v1561_v53, 9.0 }
 0x103   : > { %vm878_vm13 = vcmp.lt.f32.partialorder %v862_v22, 9.0  ;;  %vm801_vm14 = vcmp.lt.f32.partialorder %v785_v28, -2.5  ;;  %v817_v15 = vadd.f32 5.0, %v785_v28  ;;  %v790_v8 = vsel %vm758_vm11, %v1092_v19, %v742_v16 }
 0x104   : > { %vm892_vm15 = vmpackc.low %vm878_vm13, %vm877_vm12  ;;  %vm806_vm0 = vcmp.lt.f32.partialorder %v790_v8, -2.5  ;;  %v822_v59 = vadd.f32 5.0, %v790_v8 }
 0x105   : > { %v894_v30 = vsel %vm892_vm15, 16711935, %v1255_v0  ;;  %v833_v25 = vsel %vm801_vm14, %v817_v15, %v785_v28  ;;  %v704_v21 = vpop.permute.xlu1 %703  ;;  %vm883_vm14 = vcmp.lt.f32.partialorder %v1584_v12, 9.0 }
 0x106   : > { %v895_v34 = vpack.c.b8 %v894_v30, %v893_v11  ;;  %v849_v32 = vmul.f32 %v833_v25, %v833_v25  ;;  %v838_v33 = vsel %vm806_vm0, %v822_v59, %v790_v8  ;;  %v740_v36 = vsub.f32 %v704_v21, %v1500_v26  ;;  %v724_v37 = vpop.permute.xlu0 %723 }
 0x107   : > { %v854_v17 = vmul.f32 %v838_v33, %v838_v33  ;;  %v745_v38 = vsub.f32 %v724_v37, %v1500_v26 }
 0x108   : > { %vm896_vm1 = vnez %v895_v34  ;;  %v865_v54 = vadd.f32 %v849_v32, %v1461_v7  ;;  %vm756_vm2 = vcmp.ge.f32.partialorder %v740_v36, 2.5  ;;  %v1090_v40 = vadd.f32 -5.0, %v740_v36 }
 0x109   : > { %v915_v41 = vsel %vm896_vm1, 16843009, %v1255_v0  ;;  %v870_v42 = vadd.f32 %v854_v17, %v1539_v56  ;;  %vm761_vm3 = vcmp.ge.f32.partialorder %v745_v38, 2.5  ;;  %v1095_v48 = vadd.f32 -5.0, %v745_v38 }
 0x10a   : > { %919 = vst [vmem:[%s1599_s27] sm:$0xff] %v915_v41  ;;  %vm881_vm6 = vcmp.lt.f32.partialorder %v865_v54, 9.0  ;;  %v788_v31 = vsel %vm756_vm2, %v1090_v40, %v740_v36  ;;  %v899_v56 = vsel %vm1571_vm8, 16711935, %v1255_v0 }
 0x10b   : > { %vm898_vm7 = vmpackc.low %vm882_vm4, %vm881_vm6  ;;  %vm886_vm9 = vcmp.lt.f32.partialorder %v870_v42, 9.0  ;;  %vm804_vm10 = vcmp.lt.f32.partialorder %v788_v31, -2.5  ;;  %v820_v7 = vadd.f32 5.0, %v788_v31  ;;  %v793_v43 = vsel %vm761_vm3, %v1095_v48, %v745_v38 }
 0x10c   : > { %v900_v27 = vsel %vm898_vm7, 16711935, %v1255_v0  ;;  %vm1608_vm11 = vmpackc.low %vm886_vm9, %vm885_vm5  ;;  %vm809_vm12 = vcmp.lt.f32.partialorder %v793_v43, -2.5  ;;  %v825_v35 = vadd.f32 5.0, %v793_v43  ;;  %vm888_vm4 = vcmp.lt.f32.partialorder %v1578_v39, 9.0 }
 0x10d   : > { %v901_v50 = vpack.c.b8 %v900_v27, %v899_v56  ;;  %v836_v53 = vsel %vm804_vm10, %v820_v7, %v788_v31  ;;  %v716_v55 = vpop.permute.xlu1 %715  ;;  %v906_v13 = vsel %vm1608_vm11, 16711935, %v1255_v0 }
 0x10e   : > { %v852_v57 = vmul.f32 %v836_v53, %v836_v53  ;;  %v841_v58 = vsel %vm809_vm12, %v825_v35, %v793_v43  ;;  %v743_v18 = vsub.f32 %v716_v55, %v1500_v26 }
 0x10f   : > { %vm902_vm13 = vnez %v901_v50  ;;  %v857_v60 = vmul.f32 %v841_v58, %v841_v58 }
 0x110   : > { %v916_v61 = vsel %vm902_vm13, 16843009, %v1255_v0  ;;  %v868_v62 = vadd.f32 %v852_v57, %v1477_v44  ;;  %vm759_vm8 = vcmp.ge.f32.partialorder %v743_v18, 2.5  ;;  %v1093_v63 = vadd.f32 -5.0, %v743_v18 }
 0x111   : > { %920 = vst [vmem:[%s1599_s27 + $0x8] sm:$0xff] %v916_v61  ;;  %v873_v2 = vadd.f32 %v857_v60, %v1549_v23 }
 0x112   : > { %vm884_vm15 = vcmp.lt.f32.partialorder %v868_v62, 9.0  ;;  %v791_v24 = vsel %vm759_vm8, %v1093_v63, %v743_v18 }
 0x113   : > { %vm903_vm0 = vmpackc.low %vm884_vm15, %vm883_vm14  ;;  %vm807_vm1 = vcmp.lt.f32.partialorder %v791_v24, -2.5  ;;  %v823_v3 = vadd.f32 5.0, %v791_v24  ;;  %vm889_vm9 = vcmp.lt.f32.partialorder %v873_v2, 9.0 }
 0x114   : > { %v905_v44 = vsel %vm903_vm0, 16711935, %v1255_v0 }
 0x115   : > { %v907_v4 = vpack.c.b8 %v906_v13, %v905_v44  ;;  %v839_v52 = vsel %vm807_vm1, %v823_v3, %v791_v24  ;;  %v728_v5 = vpop.permute.xlu1 %727 }
 0x116   : > { %v855_v23 = vmul.f32 %v839_v52, %v839_v52  ;;  %v746_v6 = vsub.f32 %v728_v5, %v1500_v26 }
 0x117   : > { %vm908_vm2 = vnez %v907_v4 }
 0x118   : > { %v917_v51 = vsel %vm908_vm2, 16843009, %v1255_v0  ;;  %v871_v9 = vadd.f32 %v855_v23, %v1488_v45  ;;  %vm762_vm3 = vcmp.ge.f32.partialorder %v746_v6, 2.5  ;;  %v1096_v29 = vadd.f32 -5.0, %v746_v6 }
 0x119   : > { %921 = vst [vmem:[%s1599_s27 + $0x10] sm:$0xff] %v917_v51 }
 0x11a   : > { %vm887_vm5 = vcmp.lt.f32.partialorder %v871_v9, 9.0  ;;  %v794_v10 = vsel %vm762_vm3, %v1096_v29, %v746_v6 }
 0x11b   : > { %vm909_vm6 = vmpackc.low %vm888_vm4, %vm887_vm5  ;;  %vm810_vm7 = vcmp.lt.f32.partialorder %v794_v10, -2.5  ;;  %v826_v14 = vadd.f32 5.0, %v794_v10 }
 0x11c   : > { %v911_v45 = vsel %vm909_vm6, 16711935, %v1255_v0 }
 0x11d   : > { %v842_v26 = vsel %vm810_vm7, %v826_v14, %v794_v10 }
 0x11e   : > { %v858_v47 = vmul.f32 %v842_v26, %v842_v26 }
 0x120   : > { %v874_v16 = vadd.f32 %v858_v47, %v1508_v49 }
 0x122   : > { %vm890_vm10 = vcmp.lt.f32.partialorder %v874_v16, 9.0 }
 0x123   : > { %vm910_vm11 = vmpackc.low %vm890_vm10, %vm889_vm9 }
 0x124   : > { %v912_v39 = vsel %vm910_vm11, 16711935, %v1255_v0 }
 0x125   : > { %v913_v20 = vpack.c.b8 %v912_v39, %v911_v45 }
 0x127   : > { %vm914_vm12 = vnez %v913_v20 }
 0x128   : > { %v918_v49 = vsel %vm914_vm12, 16843009, %v1255_v0 }
 0x129   : > { %922 = vst [vmem:[%s1599_s27 + $0x18] sm:$0xff] %v918_v49 }
 0x12a   : > { %1202 = shalt.err (!%p1199_p8)
}
 0x12b   : > { %s1258_s1 = smov 128   ;;  %s1259_s27 = smov 8  }
 0x12c   : > { %1103 = dma.vmem_to_hbm [thread:$0]  (%p1333_p5), %s942_s14, 512, %s944_s15, %s924_s16, %s1258_s1, %s1258_s1, %s1259_s27  }
 0x12d PF: > { %p1109_p9 = scmp.ge.s32.totalorder %s1253_s24, 2  ;;  %s958_s8 = sand.u32 1, %s1233_s19  }
 0x12e   : > { %s959_s9 = scalar_lea.sflag [#allocation6], %s958_s8 }
 0x12f   : > { %p1106_p10 = pnand %p1109_p9, %p1337_p6 }
 0x131   : > { %p1107_p11 = pneg %p1106_p10 }
 0x133   : > { %1228 = dma.done.wait (%p1107_p11), %s959_s9, 512  }
 0x134   : > { %1230 = vsyncadd (%p1107_p11), %s959_s9, 4294966784  ;;  %s19_s24 = sadd.s32 1, %s1253_s24   ;;  %s1685_s19 = smov %s1237_s20 }
 0x135   : > { %p16_p12 = scmp.ge.s32.totalorder %s19_s24, 4   ;;  %s1686_s20 = smov %s1241_s21 }
 0x136   : > { %s1687_s21 = smov %s1344_s30  ;;  %s1688_s22 = smov %s1249_s23 }
 0x137   : > { %s1689_s23 = smov %s1691_s25  ;;  %18 = sbr.rel (!%p16_p12) target bundleno = 7 (0x7), region = 66 }
 0x13c   :  { %965 = vsyncpa [#allocation6], 1 }
 0x13d   :  { %967 = vsyncpa [#allocation6 + $0x1], 1 }

</bundles_post_ra>
